<compile_context>
chip_gen: v7x
topology: tpu7x:2x2x1
jax: 0.10.0
libtpu: 0.0.40
codegen_flags: <defaults>
</compile_context>

<pallas_src>
import functools

import numpy as np
import jax
import jax.numpy as jnp
from jax import lax
from jax.experimental import pallas as pl
from jax.experimental.pallas import tpu as pltpu


def _round_up(x, m):
    return ((x + m - 1) // m) * m


def _center_loss_kernel(emb_ref, tgt_col_ref, tgt_row_ref, out_ref, *,
                        n_padded_classes, mean_center):
    """Single invocation: whole batch + all classes in one pass."""
    emb = emb_ref[...].astype(jnp.float32)           # (Np, Dp)
    tgt_col = tgt_col_ref[...]                       # (Np, 1) int32 (padded rows = -1)
    tgt_row = tgt_row_ref[...]                       # (1, Np) int32

    n_pad = emb.shape[0]
    c_pad = n_padded_classes

    # One-hot membership matrices, built once from iota comparisons (VPU only).
    cls_ids_nc = lax.broadcasted_iota(jnp.int32, (n_pad, c_pad), 1)   # (Np, Cp)
    onehot_nc = (tgt_col == cls_ids_nc).astype(jnp.float32)           # (Np, Cp)
    cls_ids_cn = lax.broadcasted_iota(jnp.int32, (c_pad, n_pad), 0)   # (Cp, Np)
    onehot_cn = (tgt_row == cls_ids_cn).astype(jnp.float32)           # (Cp, Np)

    # Per-class member counts and exact reciprocal (computed once, multiplied in).
    counts = jnp.sum(onehot_cn, axis=1, keepdims=True)                # (Cp, 1)
    inv_counts = pl.reciprocal(jnp.maximum(counts, 1.0))              # (Cp, 1)
    has_members = (counts > 0.0).astype(jnp.float32)                  # (Cp, 1)

    # Class means via MXU: sum over members, then scale.
    class_sums = jnp.dot(onehot_cn, emb,
                         preferred_element_type=jnp.float32)          # (Cp, Dp)
    means = class_sums * inv_counts                                   # (Cp, Dp)

    # Gather each sample's own class mean via MXU and take the L2 distance.
    centers = jnp.dot(onehot_nc, means,
                      preferred_element_type=jnp.float32)             # (Np, Dp)
    diff = emb - centers
    dist = jnp.sqrt(jnp.sum(diff * diff, axis=1, keepdims=True))      # (Np, 1)

    if mean_center:
        per_cls_sum = jnp.dot(onehot_cn, dist,
                              preferred_element_type=jnp.float32)     # (Cp, 1)
    else:
        # Nearest class member to the class mean (lowest index on ties),
        # selected without dynamic gather.
        inf = jnp.float32(jnp.inf)
        masked_nc = jnp.where(onehot_nc > 0.0, dist, inf)             # (Np, Cp)
        min_nc = jnp.min(masked_nc, axis=0, keepdims=True)            # (1, Cp)
        row_ids_nc = lax.broadcasted_iota(jnp.int32, (n_pad, c_pad), 0)
        is_min = (masked_nc == min_nc) & (onehot_nc > 0.0)
        first_idx = jnp.min(jnp.where(is_min, row_ids_nc, n_pad),
                            axis=0, keepdims=True)                    # (1, Cp) int32
        # Per-sample pick index = first_idx of its own class (0 for padded rows).
        pick = jnp.sum(jnp.where(onehot_nc > 0.0, first_idx, 0),
                       axis=1, keepdims=True)                         # (Np, 1) int32
        col_ids_nn = lax.broadcasted_iota(jnp.int32, (n_pad, n_pad), 1)
        pick_onehot = (col_ids_nn == pick).astype(jnp.float32)        # (Np, Np)
        nearest = jnp.dot(pick_onehot, emb,
                          preferred_element_type=jnp.float32)         # (Np, Dp)
        diff2 = emb - nearest
        dist2 = jnp.sqrt(jnp.sum(diff2 * diff2, axis=1, keepdims=True))
        per_cls_sum = jnp.dot(onehot_cn, dist2,
                              preferred_element_type=jnp.float32)     # (Cp, 1)

    per_cls_loss = per_cls_sum * inv_counts * has_members             # (Cp, 1)
    # Single write of the scalar result (no per-step accumulation).
    out_ref[...] = jnp.sum(per_cls_loss, keepdims=True)


def center_loss(embeddeds, target, n_classes, mean_center=True):
    """JAX wrapper. embeddeds: (N, D) float; target: (N,) int labels."""
    N, D = embeddeds.shape
    n_pad = _round_up(N, 8)
    d_pad = _round_up(D, 128)
    c_pad = _round_up(max(n_classes, 1), 8)

    emb_p = jnp.pad(embeddeds, ((0, n_pad - N), (0, d_pad - D)))
    tgt = target.astype(jnp.int32)
    tgt_p = jnp.pad(tgt, (0, n_pad - N), constant_values=-1)   # padded rows match no class
    tgt_col = tgt_p.reshape(n_pad, 1)
    tgt_row = tgt_p.reshape(1, n_pad)

    kernel = functools.partial(_center_loss_kernel,
                               n_padded_classes=c_pad,
                               mean_center=mean_center)
    out = pl.pallas_call(
        kernel,
        out_shape=jax.ShapeDtypeStruct((1, 1), jnp.float32),
        grid_spec=pltpu.PrefetchScalarGridSpec(
            num_scalar_prefetch=0,
            grid=(1,),                                  # single step: whole problem in VMEM
            in_specs=[
                pl.BlockSpec((n_pad, d_pad), lambda i: (0, 0)),   # embeddings (lane-dense)
                pl.BlockSpec((n_pad, 1), lambda i: (0, 0)),       # labels as a column
                pl.BlockSpec((1, n_pad), lambda i: (0, 0)),       # labels as a row
            ],
            out_specs=pl.BlockSpec((1, 1), lambda i: (0, 0)),
        ),
        compiler_params=pltpu.CompilerParams(
            dimension_semantics=("arbitrary",)),
    )(emb_p, tgt_col, tgt_row)
    return out[0, 0]


def _reference_center_loss(emb, tgt, n_classes, mean_center=True):
    """Pure numpy reference mirroring the PyTorch module."""
    total = 0.0
    for i in range(n_classes):
        idx = np.nonzero(tgt == i)[0]
        if idx.size == 0:
            continue
        ei = emb[idx]
        m = ei.mean(axis=0)
        if mean_center:
            total += np.linalg.norm(ei - m, axis=1).mean()
        else:
            d = np.linalg.norm(ei - m, axis=1)
            nearest = ei[np.argsort(d)[0]]
            total += np.linalg.norm(ei - nearest, axis=1).mean()
    return np.float32(total)


if __name__ == "__main__":
    key = jax.random.PRNGKey(0)
    k_emb, k_tgt = jax.random.split(key)

    # Small shapes; D not a multiple of 128 and one empty class (id 5) to
    # exercise the padding / missing-class paths.
    N, D, n_classes = 16, 64, 6
    embeddeds = jax.random.normal(k_emb, (N, D), dtype=jnp.float32)
    target = jax.random.randint(k_tgt, (N,), 0, 5, dtype=jnp.int32)

    # mean_center=True (module default)
    loss_mc = center_loss(embeddeds, target, n_classes, mean_center=True)
    loss_mc = jax.block_until_ready(loss_mc)
    ref_mc = _reference_center_loss(np.asarray(embeddeds), np.asarray(target),
                                    n_classes, mean_center=True)
    np.testing.assert_allclose(np.asarray(loss_mc), ref_mc, rtol=1e-4, atol=1e-5)

    # mean_center=False (nearest-to-mean variant)
    loss_nn = center_loss(embeddeds, target, n_classes, mean_center=False)
    loss_nn = jax.block_until_ready(loss_nn)
    ref_nn = _reference_center_loss(np.asarray(embeddeds), np.asarray(target),
                                    n_classes, mean_center=False)
    np.testing.assert_allclose(np.asarray(loss_nn), ref_nn, rtol=1e-4, atol=1e-5)

    print("KERNEL_OK")
</pallas_src>

<mosaic_0001>
module attributes {stable_mosaic.version = 11 : i64} {
  func.func @_center_loss_kernel(%arg0: i32, %arg1: memref<16x128xf32, #tpu.memory_space<vmem>>, %arg2: memref<16x1xi32, #tpu.memory_space<vmem>>, %arg3: memref<1x16xi32, #tpu.memory_space<vmem>>, %arg4: memref<1x1xf32, #tpu.memory_space<vmem>>) attributes {dimension_semantics = [#tpu.dimension_semantics<arbitrary>], iteration_bounds = array<i64: 1>, scalar_prefetch = 0 : i64, scratch_operands = 0 : i64, tpu.core_type = #tpu.core_type<tc>, window_params = [{pipeline_mode = #tpu.pipeline_mode<synchronous>, transform_indices = @transform_0, window_bounds = array<i64: 16, 128>}, {pipeline_mode = #tpu.pipeline_mode<synchronous>, transform_indices = @transform_1, window_bounds = array<i64: 16, 1>}, {pipeline_mode = #tpu.pipeline_mode<synchronous>, transform_indices = @transform_2, window_bounds = array<i64: 1, 16>}, {pipeline_mode = #tpu.pipeline_mode<synchronous>, transform_indices = @transform_3, window_bounds = array<i64: 1, 1>}]} {
    %c0 = arith.constant 0 : index
    %c0_0 = arith.constant 0 : index
    %0 = vector.load %arg1[%c0, %c0_0] : memref<16x128xf32, #tpu.memory_space<vmem>>, vector<16x128xf32>
    %c0_1 = arith.constant 0 : index
    %c0_2 = arith.constant 0 : index
    %1 = vector.load %arg2[%c0_1, %c0_2] : memref<16x1xi32, #tpu.memory_space<vmem>>, vector<16x1xi32>
    %c0_3 = arith.constant 0 : index
    %c0_4 = arith.constant 0 : index
    %2 = vector.load %arg3[%c0_3, %c0_4] : memref<1x16xi32, #tpu.memory_space<vmem>>, vector<1x16xi32>
    %3 = tpu.iota {dimensions = array<i32: 1>} : vector<16x8xi32>
    %4 = vector.broadcast %1 : vector<16x1xi32> to vector<16x8xi32>
    %5 = arith.cmpi eq, %4, %3 : vector<16x8xi32>
    %6 = arith.extui %5 : vector<16x8xi1> to vector<16x8xi32>
    %7 = arith.sitofp %6 : vector<16x8xi32> to vector<16x8xf32>
    %8 = tpu.iota {dimensions = array<i32: 0>} : vector<8x16xi32>
    %9 = vector.broadcast %2 : vector<1x16xi32> to vector<8x16xi32>
    %10 = arith.cmpi eq, %9, %8 : vector<8x16xi32>
    %11 = arith.extui %10 : vector<8x16xi1> to vector<8x16xi32>
    %12 = arith.sitofp %11 : vector<8x16xi32> to vector<8x16xf32>
    %cst = arith.constant dense<0.000000e+00> : vector<8xf32>
    %13 = vector.multi_reduction <add>, %12, %cst [1] : vector<8x16xf32> to vector<8xf32>
    %14 = vector.shape_cast %13 : vector<8xf32> to vector<8x1xf32>
    %cst_5 = arith.constant 1.000000e+00 : f32
    %15 = vector.broadcast %cst_5 : f32 to vector<8x1xf32>
    %16 = arith.maximumf %14, %15 : vector<8x1xf32>
    %17 = tpu.reciprocal %16 : vector<8x1xf32> -> vector<8x1xf32>
    %cst_6 = arith.constant 0.000000e+00 : f32
    %18 = vector.broadcast %cst_6 : f32 to vector<8x1xf32>
    %19 = arith.cmpf ogt, %14, %18 : vector<8x1xf32>
    %20 = arith.extui %19 : vector<8x1xi1> to vector<8x1xi32>
    %21 = arith.sitofp %20 : vector<8x1xi32> to vector<8x1xf32>
    %cst_7 = arith.constant dense<0.000000e+00> : vector<8x128xf32>
    %22 = tpu.matmul %12, %0, %cst_7 {dimension_numbers = #tpu.dot_dimension_numbers<[1], [0], [0], [1], [0, 0, 1, 1], [], []>} : vector<8x16xf32>, vector<16x128xf32>, vector<8x128xf32> -> vector<8x128xf32>
    %23 = vector.broadcast %17 : vector<8x1xf32> to vector<8x128xf32>
    %24 = arith.mulf %22, %23 : vector<8x128xf32>
    %cst_8 = arith.constant dense<0.000000e+00> : vector<16x128xf32>
    %25 = tpu.matmul %7, %24, %cst_8 {dimension_numbers = #tpu.dot_dimension_numbers<[1], [0], [0], [1], [0, 0, 1, 1], [], []>} : vector<16x8xf32>, vector<8x128xf32>, vector<16x128xf32> -> vector<16x128xf32>
    %26 = arith.subf %0, %25 : vector<16x128xf32>
    %27 = arith.mulf %26, %26 : vector<16x128xf32>
    %cst_9 = arith.constant dense<0.000000e+00> : vector<16xf32>
    %28 = vector.multi_reduction <add>, %27, %cst_9 [1] : vector<16x128xf32> to vector<16xf32>
    %29 = vector.shape_cast %28 : vector<16xf32> to vector<16x1xf32>
    %30 = math.sqrt %29 : vector<16x1xf32>
    %cst_10 = arith.constant dense<0.000000e+00> : vector<8x1xf32>
    %31 = tpu.matmul %12, %30, %cst_10 {dimension_numbers = #tpu.dot_dimension_numbers<[1], [0], [0], [1], [0, 0, 1, 1], [], []>} : vector<8x16xf32>, vector<16x1xf32>, vector<8x1xf32> -> vector<8x1xf32>
    %32 = arith.mulf %31, %17 : vector<8x1xf32>
    %33 = arith.mulf %32, %21 : vector<8x1xf32>
    %34 = vector.shape_cast %33 : vector<8x1xf32> to vector<1x8x1xf32>
    %cst_11 = arith.constant dense<0.000000e+00> : vector<1xf32>
    %35 = vector.multi_reduction <add>, %34, %cst_11 [1, 2] : vector<1x8x1xf32> to vector<1xf32>
    %36 = vector.shape_cast %35 : vector<1xf32> to vector<1x1x1xf32>
    %37 = vector.extract %36[0, 0, 0] : f32 from vector<1x1x1xf32>
    %38 = vector.broadcast %37 : f32 to vector<1x1xf32>
    %c0_12 = arith.constant 0 : index
    %c0_13 = arith.constant 0 : index
    %39 = vector.load %arg4[%c0_12, %c0_13] : memref<1x1xf32, #tpu.memory_space<vmem>>, vector<1x1xf32>
    tpu.vector_store %arg4[%c0_12, %c0_13], %38 {strides = array<i32>} : memref<1x1xf32, #tpu.memory_space<vmem>>, vector<1x1xf32>,
    return
  }
  func.func @transform_0(%arg0: i32) -> (i32, i32) {
    %c0_i32 = arith.constant 0 : i32
    %c0_i32_0 = arith.constant 0 : i32
    %c0_i32_1 = arith.constant 0 : i32
    return %c0_i32, %c0_i32_0 : i32, i32
  }
  func.func @transform_1(%arg0: i32) -> (i32, i32) {
    %c0_i32 = arith.constant 0 : i32
    %c0_i32_0 = arith.constant 0 : i32
    %c0_i32_1 = arith.constant 0 : i32
    return %c0_i32, %c0_i32_0 : i32, i32
  }
  func.func @transform_2(%arg0: i32) -> (i32, i32) {
    %c0_i32 = arith.constant 0 : i32
    %c0_i32_0 = arith.constant 0 : i32
    %c0_i32_1 = arith.constant 0 : i32
    return %c0_i32, %c0_i32_0 : i32, i32
  }
  func.func @transform_3(%arg0: i32) -> (i32, i32) {
    %c0_i32 = arith.constant 0 : i32
    %c0_i32_0 = arith.constant 0 : i32
    %c0_i32_1 = arith.constant 0 : i32
    return %c0_i32, %c0_i32_0 : i32, i32
  }
}

</mosaic_0001>

<bundles_post_ra>
// kernel: tpu_custom_call.1
= control target key start
LH: loop header
LB: loop body
LE: loop exit
PB: predicated region body
PF: predicated region fallthrough
CT: control target
= control target key end

     0   :  { %v20_v2 = vlaneseq  ;;  %v412_v3 = vmov 0.0|0.0   ;;  %vm413_vm0 = vmmov 0   ;;  %v414_v5 = vmov 0.0   ;;  %s475_s0 = inlined_call_operand.vmem [shape: f32[16,128], index: 0, kind: input, shape index: {}]   ;;  %s476_s1 = inlined_call_operand.vmem [shape: s32[16,1], index: 1, kind: input, shape index: {}]   ;;  %s477_s2 = inlined_call_operand.vmem [shape: s32[1,16], index: 2, kind: input, shape index: {}]   ;;  %s478_s3 = inlined_call_operand.hbm [shape: f32[1,1], index: 3, kind: output, shape index: {}]  }
   0x1   :  { %v15_v0 = vld [vmem:[%s475_s0] sm:$0xff]  ;;  %v16_v1 = vld [vmem:[%s475_s0 + $0x8] sm:$0xff]  ;;  %367 = vmatprep.subr.bf16.mxu0 %v412_v3  ;;  %352 = vmatprep.mubr.msk.f32.mxu0 %vm413_vm0, %v414_v5  ;;  %v415_v9 = vmov 0  }
   0x2   :  { %v368_v4 = vpack.c.bf16 %v16_v1, %v15_v0  ;;  %v332_v6 = vld [vmem:[%s477_s2] ss:$0 sm:$0xff]  ;;  %v18_v7 = vld [vmem:[%s476_s1 + $0x8] sm:$0xff]  ;;  %v35_v8 = vshrl.u32 %v20_v2, 7  ;;  %380 = vset.pattern.permute.xlu0 %v415_v9  ;;  %381 = vset.pattern.permute.xlu1 %v415_v9 }
   0x3   :  { %8 = vsyncpa [#allocation3], 0  ;;  %vm43_vm1 = vcmask 130048   ;;  %26 = vperm.xlu1 %381, %v18_v7   ;;  %v17_v12 = vld [vmem:[%s476_s1] sm:$0xff]  ;;  %v21_v14 = vand.u32 127, %v20_v2  ;;  %vm126_vm3 = vcmask 64512  }
   0x4   :  { %369 = vmatpush3.bf16.msra.mxu0 %v368_v4  ;;  %vm40_vm2 = vcmp.eq.s32.totalorder %v332_v6, %v35_v8  ;;  %vm302_vm11 = vcmask 7168   ;;  %s416_s1 = smov [#allocation2]   ;;  %vm314_vm12 = vcmask 0  }
   0x5   :  { %v333_v10 = vsel %vm40_vm2, 1.0, %v414_v5  ;;  %s322_s20 = sshll.u32 %s416_s1, 4  ;;  %s323_s20 = int_to_ptr.vmem [resolvable:$true] %s322_s20 }
   0x6   :  { %v44_v11 = vsel %vm43_vm1, %v333_v10, 0.0  ;;  %s388_s22 = scalar_lea.vmem %s323_s20, 16  ;;  %s392_s23 = scalar_lea.vmem %s323_s20, 32 }
   0x7   :  { %353 = vmatmul.mubr.msk.f32.vlgmr.msra.gmra.mrb[0].mxu0 %vm43_vm1, %v333_v10  ;;  %45 = vadd.xlane.f32.xlu0 %v44_v11  ;;  %p389_p0 = scmp.ne.s32.totalorder %s323_s20, %s388_s22  ;;  %p393_p1 = scmp.lt.s32.totalorder %s323_s20, %s323_s20 }
   0x8   :  { %p394_p2 = scmp.lt.s32.totalorder %s392_s23, %s388_s22 }
   0xa   :  { %p395_p3 = por %p394_p2, %p393_p1 }
   0xc   :  { %p396_p4 = pnand %p395_p3, %p389_p0 }
  0x1d   :  { %23 = vperm.xlu0 %380, %v17_v12  }
  0x82   :  { %v27_v18 = vpop.permute.xlu1 %26 }
  0x83   :  { %vm29_vm5 = vcmp.eq.s32.totalorder %v27_v18, %v21_v14 }
  0x84   :  { %v331_v23 = vsel %vm29_vm5, 1.0, %v414_v5 }
  0x94   :  { %v46_v13 = vpop.xlane.xlu0 %45 }
  0x95   :  { %v47_v17 = vmax.f32 %v46_v13, 1.0  ;;  %vm49_vm10 = vcmp.gt.f32.partialorder %v46_v13, 0.0 }
  0x96   :  { %v334_v46 = vsel %vm49_vm10, 1.0, %v414_v5 }
  0x97   :  { %382 = vrcp.f32 %v47_v17 }
  0x9c   :  { %v24_v15 = vpop.permute.xlu0 %23 }
  0x9d   :  { %vm28_vm4 = vcmp.eq.s32.totalorder %v24_v15, %v21_v14 }
  0x9e   :  { %v330_v16 = vsel %vm28_vm4, 1.0, %v414_v5 }
  0x9f   :  { %357 = vmatprep.mubr.msk.f32.mxu1 %vm126_vm3, %v330_v16 }
  0xa1   :  { %v383_v19 = vpop.eup %382 }
  0xda   :  { %v121_v20 = vpop.f32.mrb[0].mxu0 }
  0xdb   :  { %v125_v21 = vmul.f32 %v383_v19, %v121_v20  ;;  %v354_v22 = vpop.f32.mrb[1].mxu0 }
  0xdd   :  { %355 = vmatprep.subr.mxu1 %v125_v21 }
  0xde   :  { %356 = vmatpush3.msra.mxu1 %v125_v21 }
  0xdf   :  { %358 = vmatmul.mubr.msk.f32.vlgmr.msra.gmra.mrb[0].mxu1 %vm126_vm3, %v331_v23  ;;  %370 = vmatprep.subr.bf16.mxu1 %v412_v3 }
  0xe0   :  { %364 = vmatprep.mubr.msk.f32.mxu1 %vm413_vm0, %v414_v5 }
 0x1b2   :  { %v359_v24 = vpop.f32.mrb[0].mxu1 }
 0x1b3   :  { %v199_v25 = vpop.f32.mrb[1].mxu1  ;;  %v209_v27 = vsub.f32 %v16_v1, %v359_v24 }
 0x1b4   :  { %v208_v26 = vsub.f32 %v15_v0, %v199_v25 }
 0x1b5   :  { %v211_v29 = vmul.f32 %v209_v27, %v209_v27 }
 0x1b6   :  { %v210_v28 = vmul.f32 %v208_v26, %v208_v26 }
 0x1b8   :  { %212 = vadd.xlane.f32.xlu1 %v210_v28 }
 0x1bc   :  { %214 = vadd.xlane.f32.xlu1 %v211_v29 }
 0x245   :  { %v213_v30 = vpop.xlane.xlu1 %212 }
 0x246   :  { %384 = vrsqrt.f32 %v213_v30  ;;  %vm218_vm6 = vcmp.eq.f32.partialorder %v213_v30, inf  ;;  %v221_v37 = vand.u32 2147483648, %v213_v30  ;;  %vm220_vm8 = vcmp.eq.f32.partialorder %v213_v30, 0.0 }
 0x249   :  { %v215_v31 = vpop.xlane.xlu1 %214 }
 0x24a   :  { %386 = vrsqrt.f32 %v215_v31  ;;  %vm225_vm7 = vcmp.eq.f32.partialorder %v215_v31, inf  ;;  %v228_v38 = vand.u32 2147483648, %v215_v31  ;;  %vm227_vm9 = vcmp.eq.f32.partialorder %v215_v31, 0.0 }
 0x250   :  { %v385_v32 = vpop.eup %384 }
 0x251   :  { %v217_v33 = vmul.f32 %v385_v32, %v213_v30 }
 0x253   :  { %v219_v36 = vsel %vm218_vm6, %v213_v30, %v217_v33 }
 0x254   :  { %v387_v34 = vpop.eup %386  ;;  %v222_v40 = vsel %vm220_vm8, %v221_v37, %v219_v36 }
 0x255   :  { %v224_v35 = vmul.f32 %v387_v34, %v215_v31 }
 0x257   :  { %v226_v39 = vsel %vm225_vm7, %v215_v31, %v224_v35 }
 0x258   :  { %v229_v41 = vsel %vm227_vm9, %v228_v38, %v226_v39 }
 0x259   :  { %v371_v42 = vpack.c.bf16 %v229_v41, %v222_v40 }
 0x25b   :  { %372 = vmatpush3.bf16.msra.mxu1 %v371_v42 }
 0x25e   :  { %365 = vmatmul.mubr.msk.f32.vlgmr.msra.gmra.mrb[2].mxu1 %vm43_vm1, %v333_v10 }
 0x331   :  { %v296_v43 = vpop.f32.mrb[2].mxu1 }
 0x332   :  { %v300_v44 = vmul.f32 %v383_v19, %v296_v43  ;;  %v366_v45 = vpop.f32.mrb[3].mxu1 }
 0x334   :  { %v301_v47 = vmul.f32 %v334_v46, %v300_v44 }
 0x336   :  { %v303_v48 = vsel %vm302_vm11, %v301_v47, 0.0 }
 0x337   :  { %304 = vadd.xlane.f32.xlu1 %v303_v48 }
 0x3c4   :  { %v305_v49 = vpop.xlane.xlu1 %304 }
 0x3c5   :  { %v306_v50 = vrot.slane %v305_v49, 4 }
 0x3c7   :  { %v307_v51 = vadd.f32 %v306_v50, %v305_v49 }
 0x3c9   :  { %v308_v52 = vrot.slane %v307_v51, 2 }
 0x3cb   :  { %v309_v53 = vadd.f32 %v308_v52, %v307_v51 }
 0x3cd   :  { %v310_v54 = vrot.slane %v309_v53, 1 }
 0x3cf   :  { %v311_v55 = vadd.f32 %v310_v54, %v309_v53 }
 0x3d1   :  { %373 = vpush %v311_v55 }
 0x402   :  { %s374_s21 = spop %373 }
 0x403   :  { %v313_v56 = vstv %s374_s21 }
 0x404   :  { %315 = vst.msk [vmem:[#allocation2] sm:$0x1] %vm314_vm12, %v313_v56 }
 0x405   :  { %399 = shalt.err (!%p396_p4)
}
 0x406   :  { %s400_s26 = scalar_lea.hbm %s478_s3, 16 }
 0x407   :  { %p401_p5 = scmp.ne.s32.totalorder %s478_s3, %s400_s26  ;;  %p404_p6 = scmp.lt.u32.totalorder %s400_s26, %s478_s3 }
 0x409   :  { %p406_p7 = pnand %p404_p6, %p401_p5 }
 0x40b   :  { %409 = shalt.err (!%p406_p7)
}
 0x40c   :  { %325 = dma.vmem_to_hbm [thread:$0]  %s323_s20, 16, %s478_s3, [#allocation3]  }
 0x40d   :  { %410 = dma.done.wait [#allocation3], 16  }
 0x40e   :  { %411 = vsyncadd [#allocation3], 4294967280 }
 0x40f   :  { %329 = vsyncpa [#allocation3], 1 }

</bundles_post_ra>
